<compile_context>
chip_gen: v6e
topology: v6e:2x2x1
jax: 0.10.0
libtpu: 0.0.40
codegen_flags: <defaults>
</compile_context>

<pallas_src>
import numpy as np
import jax
import jax.numpy as jnp
from jax.experimental import pallas as pl
from jax.experimental.pallas import tpu as pltpu

# ------------------------------------ configuration --------------------------------------
N_BLOCKS = 2      # MADE + BatchNorm blocks inside the MAF
N_COMP   = 3      # mixture components of the MADE-MOG
L        = 8      # input_size (== state_size here)
H        = 32     # hidden_size
N_HIDDEN = 1      # hidden masked layers per MADE
BATCH    = 2
BN_EPS   = 1e-5
CL       = N_COMP * L          # 24
LANE     = 128
OUT_PAD  = 128                 # lane-dense output width: [u_all | ld_all | 0-pad]

assert N_BLOCKS == 2, "kernel is written for 2 MAF blocks"
assert 2 * CL <= OUT_PAD

# --------------------------- static single-slab layout (lane offsets) --------------------
# 32-row weights: one 128-lane-aligned column segment each, all 32 sublanes used.
W32_SEGS = {
    'a0_w1': (0 * LANE, H),
    'a0_w2': (1 * LANE, 2 * L),
    'a1_w1': (2 * LANE, H),
    'a1_w2': (3 * LANE, 2 * L),
    'g_w1':  (4 * LANE, H),
    'g_w2':  (5 * LANE, 2 * CL),     # dead logr columns dropped at pack time
}
# 8-row weights: sublane-stacked (row starts 0/8/16/24) inside ONE 128-aligned segment.
W8_COL = 6 * LANE
W8_SEGS = {
    'w_proj': (0, L),
    'a0_w0':  (8, H),
    'a1_w0':  (16, H),
    'g_w0':   (24, H),
}
# bias / BatchNorm rows: one sublane each inside ONE 128-aligned segment.
B_COL = 7 * LANE
B_SEGS = {
    'b_proj': (0, L),
    'a0_b0': (1, H), 'a0_b1': (2, H), 'a0_b2': (3, 2 * L),
    'bn0_s': (4, L), 'bn0_t': (5, L),
    'a1_b0': (6, H), 'a1_b1': (7, H), 'a1_b2': (8, 2 * L),
    'bn1_s': (9, L), 'bn1_t': (10, L),
    'g_b0': (11, H), 'g_b1': (12, H), 'g_b2': (13, 2 * CL),
    'bn_ld': (14, L),                 # folded constant BN log-det of BOTH blocks
}
SLAB_ROWS = H                         # 32
SLAB_COLS = 8 * LANE                  # 1024  (~128 KiB f32 -> trivially fits VMEM)

assert 4 * L <= SLAB_ROWS
assert max(r for r, _ in B_SEGS.values()) < SLAB_ROWS
assert B_COL + LANE <= SLAB_COLS


# ------------------------------------ mask construction ----------------------------------
def create_masks_np(input_size, hidden_size, n_hidden, input_degrees=None):
    """numpy port of create_masks (sequential order)."""
    degrees = []
    degrees.append(np.arange(input_size) if input_degrees is None
                   else np.asarray(input_degrees))
    for _ in range(n_hidden + 1):
        degrees.append(np.arange(hidden_size) % (input_size - 1))
    if input_degrees is None:
        degrees.append(np.arange(input_size) % input_size - 1)
    else:
        degrees.append(np.asarray(input_degrees) % input_size - 1)
    masks = [(d1[:, None] >= d0[None, :]).astype(np.float32)
             for d0, d1 in zip(degrees[:-1], degrees[1:])]
    return masks, degrees[0]


def masked_linear(key, fan_in, fan_out, mask=None):
    """nn.Linear-style init; mask pre-multiplied; returns (W^T (in,out), b (1,out))."""
    kw, kb = jax.random.split(key)
    bound = 1.0 / np.sqrt(fan_in)
    w = jax.random.uniform(kw, (fan_out, fan_in), jnp.float32, -bound, bound)
    if mask is not None:
        w = w * jnp.asarray(mask, jnp.float32)
    b = jax.random.uniform(kb, (fan_out,), jnp.float32, -bound, bound)
    return w.T, b.reshape(1, fan_out)


def build_params(key):
    """Raw (per-layer) parameters; identical semantics to the torch module."""
    keys = jax.random.split(key, 16)
    ki = iter(keys)
    params = []

    # MAF.linear1 : state_size -> input_size (unmasked)
    params += list(masked_linear(next(ki), L, L))

    # BatchNorm (eval-mode, fresh buffers) folded to scale / shift / per-dim logdet
    bn_scale  = jnp.ones((1, L), jnp.float32) / np.sqrt(1.0 + BN_EPS)
    bn_shift  = jnp.zeros((1, L), jnp.float32)
    bn_logdet = jnp.full((1, L), -0.5 * np.log(1.0 + BN_EPS), jnp.float32)

    in_deg = None
    for _ in range(N_BLOCKS):
        masks, deg0 = create_masks_np(L, H, N_HIDDEN, in_deg)
        in_deg = deg0[::-1].copy()           # .flip(0) handed to the next block
        params += list(masked_linear(next(ki), L, H, masks[0]))
        params += list(masked_linear(next(ki), H, H, masks[1]))
        params += list(masked_linear(next(ki), H, 2 * L, np.tile(masks[2], (2, 1))))
        params += [bn_scale, bn_shift, bn_logdet]

    # MADE-MOG: input_degrees = flip of the last MADE's degrees (== in_deg now)
    masks, _ = create_masks_np(L, H, N_HIDDEN, in_deg)
    params += list(masked_linear(next(ki), L, H, masks[0]))
    params += list(masked_linear(next(ki), H, H, masks[1]))
    params += list(masked_linear(next(ki), H, 3 * N_COMP * L,
                                 np.tile(masks[2], (N_COMP * 3, 1))))
    return params


# -------------------------------- host-side parameter packing ----------------------------
def pack_params(params):
    """Pack all layer parameters into ONE (32, 1024) f32 slab (see layout tables above)."""
    (w_proj, b_proj,
     a0_w0, a0_b0, a0_w1, a0_b1, a0_w2, a0_b2, bn0_s, bn0_t, bn0_ld,
     a1_w0, a1_b0, a1_w1, a1_b1, a1_w2, a1_b2, bn1_s, bn1_t, bn1_ld,
     g_w0, g_b0, g_w1, g_b1, g_w2, g_b2) = [np.asarray(p, np.float32) for p in params]

    # MOG head column permutation: torch layout j = c*3L + t*L + l (t: m / loga / logr)
    # -> quantity-major [m_all | loga_all]; the dead logr (t==2) columns are dropped.
    perm = np.asarray([c * 3 * L + t * L + l
                       for t in range(2) for c in range(N_COMP) for l in range(L)])
    g_w2 = g_w2[:, perm]
    g_b2 = g_b2[:, perm]
    bn_ld = bn0_ld + bn1_ld            # constant eval-mode BN log-det of both blocks

    slab = np.zeros((SLAB_ROWS, SLAB_COLS), np.float32)

    w32 = dict(a0_w1=a0_w1, a0_w2=a0_w2, a1_w1=a1_w1, a1_w2=a1_w2, g_w1=g_w1, g_w2=g_w2)
    for name, (col, n) in W32_SEGS.items():
        slab[:, col:col + n] = w32[name]

    w8 = dict(w_proj=w_proj, a0_w0=a0_w0, a1_w0=a1_w0, g_w0=g_w0)
    for name, (row, n) in W8_SEGS.items():
        slab[row:row + L, W8_COL:W8_COL + n] = w8[name]

    bias = dict(b_proj=b_proj, a0_b0=a0_b0, a0_b1=a0_b1, a0_b2=a0_b2,
                bn0_s=bn0_s, bn0_t=bn0_t,
                a1_b0=a1_b0, a1_b1=a1_b1, a1_b2=a1_b2,
                bn1_s=bn1_s, bn1_t=bn1_t,
                g_b0=g_b0, g_b1=g_b1, g_b2=g_b2, bn_ld=bn_ld)
    for name, (row, n) in B_SEGS.items():
        slab[row, B_COL:B_COL + n] = bias[name].reshape(-1)

    return jnp.asarray(slab)


# -------------------------------------- Pallas kernel ------------------------------------
def mafmog_kernel(x_ref, p_ref, out_ref):
    f32 = jnp.float32

    def dot(a, w):
        return jnp.dot(a, w, preferred_element_type=f32)

    # static Python offsets -> aligned Ref-window loads (no whole-slab load + value slice)
    def w32(name):
        col, n = W32_SEGS[name]
        return p_ref[0:H, col:col + n]

    def w8(name):
        row, n = W8_SEGS[name]
        return p_ref[row:row + L, W8_COL:W8_COL + n]

    def bias(name):
        row, n = B_SEGS[name]
        return p_ref[row:row + 1, B_COL:B_COL + n]

    x = x_ref[...]
    # MAF state projection: relu(linear1(x))
    z = jnp.maximum(dot(x, w8('w_proj')) + bias('b_proj'), 0.0)
    # running sum of log|det J|, seeded with the folded (constant) BatchNorm contribution
    sum_ld = bias('bn_ld')                                          # (1, L)

    for w0n, w1n, w2n, b0n, b1n, b2n, sn, tn in (
        ('a0_w0', 'a0_w1', 'a0_w2', 'a0_b0', 'a0_b1', 'a0_b2', 'bn0_s', 'bn0_t'),
        ('a1_w0', 'a1_w1', 'a1_w2', 'a1_b0', 'a1_b1', 'a1_b2', 'bn1_s', 'bn1_t'),
    ):
        h = jnp.maximum(dot(z, w8(w0n)) + bias(b0n), 0.0)           # MaskedLinear -> ReLU
        h = jnp.maximum(dot(h, w32(w1n)) + bias(b1n), 0.0)          # MaskedLinear -> ReLU
        out = dot(h, w32(w2n)) + bias(b2n)                          # output MaskedLinear
        m, loga = out[:, :L], out[:, L:2 * L]
        z = (z - m) * jnp.exp(-loga)                                # MADE forward
        sum_ld = sum_ld - loga
        z = z * bias(sn) + bias(tn)                                 # BatchNorm (eval mode)

    # MADE-MOG head; weight columns pre-permuted to [m_all | loga_all], logr dropped
    h = jnp.maximum(dot(z, w8('g_w0')) + bias('g_b0'), 0.0)
    h = jnp.maximum(dot(h, w32('g_w1')) + bias('g_b1'), 0.0)
    out = dot(h, w32('g_w2')) + bias('g_b2')                        # (N, 2*C*L)
    m_all, loga_all = out[:, :CL], out[:, CL:2 * CL]

    z_rep  = jnp.concatenate([z] * N_COMP, axis=1)                  # (N, C*L)
    ld_rep = jnp.concatenate([sum_ld] * N_COMP, axis=1)             # (N, C*L)
    u_all  = (z_rep - m_all) * jnp.exp(-loga_all)                   # one exp, vectorized
    ld_all = ld_rep - loga_all

    pad = jnp.zeros((BATCH, OUT_PAD - 2 * CL), f32)
    # single lane-dense unmasked full-width store: [ u_all | ld_all | 0-pad ]
    out_ref[...] = jnp.concatenate([u_all, ld_all, pad], axis=1)


# ------------------------------- one-time builder + jitted wrapper -----------------------
def build_mafmog_forward(params):
    """Hoist packing / kernel construction out of the hot path. Returns a jitted forward."""
    slab = pack_params(params)

    flops = 2 * BATCH * (L * L
                         + N_BLOCKS * (L * H + H * H + H * 2 * L)
                         + (L * H + H * H + H * 2 * CL))
    transcendentals = BATCH * (N_BLOCKS * L + CL)
    bytes_accessed = 4 * (BATCH * L + SLAB_ROWS * SLAB_COLS + BATCH * OUT_PAD)

    vmem = pl.BlockSpec(memory_space=pltpu.MemorySpace.VMEM)
    fused_call = pl.pallas_call(
        mafmog_kernel,
        out_shape=jax.ShapeDtypeStruct((BATCH, OUT_PAD), jnp.float32),
        in_specs=[vmem, vmem],
        out_specs=vmem,
        cost_estimate=pl.CostEstimate(flops=int(flops),
                                      transcendentals=int(transcendentals),
                                      bytes_accessed=int(bytes_accessed)),
    )

    @jax.jit
    def _forward(x, slab):
        fused = fused_call(x, slab)
        # layout glue: split the fused slab and reshape to torch's (N, C, L) convention
        u      = fused[:, :CL].reshape(BATCH, N_COMP, L)
        logdet = fused[:, CL:2 * CL].reshape(BATCH, N_COMP, L)
        return u, logdet

    return lambda x: _forward(x, slab)


# ----------------------------------- pure-JAX reference ----------------------------------
def reference_forward(x, params):
    (w_proj, b_proj,
     a0_w0, a0_b0, a0_w1, a0_b1, a0_w2, a0_b2, bn0_s, bn0_t, bn0_ld,
     a1_w0, a1_b0, a1_w1, a1_b1, a1_w2, a1_b2, bn1_s, bn1_t, bn1_ld,
     g_w0, g_b0, g_w1, g_b1, g_w2, g_b2) = params
    hp = jax.lax.Precision.HIGHEST

    def dot(a, b):
        return jnp.dot(a, b, precision=hp)

    z = jnp.maximum(dot(x, w_proj) + b_proj, 0.0)
    sum_ld = jnp.zeros_like(z)
    for (w0, b0, w1, b1, w2, b2, s, t, ld) in (
        (a0_w0, a0_b0, a0_w1, a0_b1, a0_w2, a0_b2, bn0_s, bn0_t, bn0_ld),
        (a1_w0, a1_b0, a1_w1, a1_b1, a1_w2, a1_b2, bn1_s, bn1_t, bn1_ld),
    ):
        h = jnp.maximum(dot(z, w0) + b0, 0.0)
        h = jnp.maximum(dot(h, w1) + b1, 0.0)
        out = dot(h, w2) + b2
        m, loga = out[:, :L], out[:, L:]
        z = (z - m) * jnp.exp(-loga)
        sum_ld = sum_ld - loga
        z = z * s + t
        sum_ld = sum_ld + ld
    h = jnp.maximum(dot(z, g_w0) + g_b0, 0.0)
    h = jnp.maximum(dot(h, g_w1) + g_b1, 0.0)
    out = (dot(h, g_w2) + g_b2).reshape(BATCH, N_COMP, 3 * L)
    m, loga = out[..., :L], out[..., L:2 * L]
    xr = jnp.broadcast_to(z[:, None, :], (BATCH, N_COMP, L))
    u = (xr - m) * jnp.exp(-loga)
    return u, sum_ld[:, None, :] + (-loga)


# -------------------------------------------- main ---------------------------------------
if __name__ == "__main__":
    key = jax.random.PRNGKey(0)
    kx, kp = jax.random.split(key)
    x = jax.random.normal(kx, (BATCH, L), jnp.float32)
    params = build_params(kp)

    forward = build_mafmog_forward(params)   # one-time: pack + build pallas_call
    u, logdet = forward(x)                   # jitted hot path (kernel only)
    jax.block_until_ready((u, logdet))

    u_ref, ld_ref = reference_forward(x, params)
    np.testing.assert_allclose(np.asarray(u), np.asarray(u_ref), rtol=1e-3, atol=1e-3)
    np.testing.assert_allclose(np.asarray(logdet), np.asarray(ld_ref), rtol=1e-3, atol=1e-3)

    print("KERNEL_OK")
</pallas_src>

<mosaic_0001>
module attributes {stable_mosaic.version = 11 : i64} {
  func.func @mafmog_kernel(%arg0: memref<2x8xf32, #tpu.memory_space<vmem>>, %arg1: memref<32x1024xf32, #tpu.memory_space<vmem>>, %arg2: memref<2x128xf32, #tpu.memory_space<vmem>>) attributes {dimension_semantics = [], scalar_prefetch = 0 : i64, scratch_operands = 0 : i64, tpu.core_type = #tpu.core_type<tc>} {
    %c0 = arith.constant 0 : index
    %c0_0 = arith.constant 0 : index
    %0 = vector.load %arg0[%c0, %c0_0] : memref<2x8xf32, #tpu.memory_space<vmem>>, vector<2x8xf32>
    %c0_1 = arith.constant 0 : index
    %c768 = arith.constant 768 : index
    %1 = vector.load %arg1[%c0_1, %c768] : memref<32x1024xf32, #tpu.memory_space<vmem>>, vector<8x8xf32>
    %cst = arith.constant dense<0.000000e+00> : vector<2x8xf32>
    %2 = tpu.matmul %0, %1, %cst {dimension_numbers = #tpu.dot_dimension_numbers<[1], [0], [0], [1], [0, 0, 1, 1], [], []>} : vector<2x8xf32>, vector<8x8xf32>, vector<2x8xf32> -> vector<2x8xf32>
    %c0_2 = arith.constant 0 : index
    %c896 = arith.constant 896 : index
    %3 = vector.load %arg1[%c0_2, %c896] : memref<32x1024xf32, #tpu.memory_space<vmem>>, vector<1x8xf32>
    %4 = vector.broadcast %3 : vector<1x8xf32> to vector<2x8xf32>
    %5 = arith.addf %2, %4 : vector<2x8xf32>
    %cst_3 = arith.constant 0.000000e+00 : f32
    %6 = vector.broadcast %cst_3 : f32 to vector<2x8xf32>
    %7 = arith.maximumf %5, %6 : vector<2x8xf32>
    %c14 = arith.constant 14 : index
    %c896_4 = arith.constant 896 : index
    %8 = vector.load %arg1[%c14, %c896_4] : memref<32x1024xf32, #tpu.memory_space<vmem>>, vector<1x8xf32>
    %c8 = arith.constant 8 : index
    %c768_5 = arith.constant 768 : index
    %9 = vector.load %arg1[%c8, %c768_5] : memref<32x1024xf32, #tpu.memory_space<vmem>>, vector<8x32xf32>
    %cst_6 = arith.constant dense<0.000000e+00> : vector<2x32xf32>
    %10 = tpu.matmul %7, %9, %cst_6 {dimension_numbers = #tpu.dot_dimension_numbers<[1], [0], [0], [1], [0, 0, 1, 1], [], []>} : vector<2x8xf32>, vector<8x32xf32>, vector<2x32xf32> -> vector<2x32xf32>
    %c1 = arith.constant 1 : index
    %c896_7 = arith.constant 896 : index
    %11 = vector.load %arg1[%c1, %c896_7] : memref<32x1024xf32, #tpu.memory_space<vmem>>, vector<1x32xf32>
    %12 = vector.broadcast %11 : vector<1x32xf32> to vector<2x32xf32>
    %13 = arith.addf %10, %12 : vector<2x32xf32>
    %cst_8 = arith.constant 0.000000e+00 : f32
    %14 = vector.broadcast %cst_8 : f32 to vector<2x32xf32>
    %15 = arith.maximumf %13, %14 : vector<2x32xf32>
    %c0_9 = arith.constant 0 : index
    %c0_10 = arith.constant 0 : index
    %16 = vector.load %arg1[%c0_9, %c0_10] : memref<32x1024xf32, #tpu.memory_space<vmem>>, vector<32x32xf32>
    %cst_11 = arith.constant dense<0.000000e+00> : vector<2x32xf32>
    %17 = tpu.matmul %15, %16, %cst_11 {dimension_numbers = #tpu.dot_dimension_numbers<[1], [0], [0], [1], [0, 0, 1, 1], [], []>} : vector<2x32xf32>, vector<32x32xf32>, vector<2x32xf32> -> vector<2x32xf32>
    %c2 = arith.constant 2 : index
    %c896_12 = arith.constant 896 : index
    %18 = vector.load %arg1[%c2, %c896_12] : memref<32x1024xf32, #tpu.memory_space<vmem>>, vector<1x32xf32>
    %19 = vector.broadcast %18 : vector<1x32xf32> to vector<2x32xf32>
    %20 = arith.addf %17, %19 : vector<2x32xf32>
    %cst_13 = arith.constant 0.000000e+00 : f32
    %21 = vector.broadcast %cst_13 : f32 to vector<2x32xf32>
    %22 = arith.maximumf %20, %21 : vector<2x32xf32>
    %c0_14 = arith.constant 0 : index
    %c128 = arith.constant 128 : index
    %23 = vector.load %arg1[%c0_14, %c128] : memref<32x1024xf32, #tpu.memory_space<vmem>>, vector<32x16xf32>
    %cst_15 = arith.constant dense<0.000000e+00> : vector<2x16xf32>
    %24 = tpu.matmul %22, %23, %cst_15 {dimension_numbers = #tpu.dot_dimension_numbers<[1], [0], [0], [1], [0, 0, 1, 1], [], []>} : vector<2x32xf32>, vector<32x16xf32>, vector<2x16xf32> -> vector<2x16xf32>
    %c3 = arith.constant 3 : index
    %c896_16 = arith.constant 896 : index
    %25 = vector.load %arg1[%c3, %c896_16] : memref<32x1024xf32, #tpu.memory_space<vmem>>, vector<1x16xf32>
    %26 = vector.broadcast %25 : vector<1x16xf32> to vector<2x16xf32>
    %27 = arith.addf %24, %26 : vector<2x16xf32>
    %28 = vector.extract_strided_slice %27 {offsets = [0, 0], sizes = [2, 8], strides = [1, 1]} : vector<2x16xf32> to vector<2x8xf32>
    %29 = vector.extract_strided_slice %27 {offsets = [0, 8], sizes = [2, 8], strides = [1, 1]} : vector<2x16xf32> to vector<2x8xf32>
    %30 = arith.subf %7, %28 : vector<2x8xf32>
    %cst_17 = arith.constant 0.000000e+00 : f32
    %31 = vector.broadcast %cst_17 : f32 to vector<2x8xf32>
    %32 = arith.subf %31, %29 : vector<2x8xf32>
    %33 = math.exp %32 : vector<2x8xf32>
    %34 = arith.mulf %30, %33 : vector<2x8xf32>
    %35 = vector.broadcast %8 : vector<1x8xf32> to vector<2x8xf32>
    %36 = arith.subf %35, %29 : vector<2x8xf32>
    %c4 = arith.constant 4 : index
    %c896_18 = arith.constant 896 : index
    %37 = vector.load %arg1[%c4, %c896_18] : memref<32x1024xf32, #tpu.memory_space<vmem>>, vector<1x8xf32>
    %38 = vector.broadcast %37 : vector<1x8xf32> to vector<2x8xf32>
    %39 = arith.mulf %34, %38 : vector<2x8xf32>
    %c5 = arith.constant 5 : index
    %c896_19 = arith.constant 896 : index
    %40 = vector.load %arg1[%c5, %c896_19] : memref<32x1024xf32, #tpu.memory_space<vmem>>, vector<1x8xf32>
    %41 = vector.broadcast %40 : vector<1x8xf32> to vector<2x8xf32>
    %42 = arith.addf %39, %41 : vector<2x8xf32>
    %c16 = arith.constant 16 : index
    %c768_20 = arith.constant 768 : index
    %43 = vector.load %arg1[%c16, %c768_20] : memref<32x1024xf32, #tpu.memory_space<vmem>>, vector<8x32xf32>
    %cst_21 = arith.constant dense<0.000000e+00> : vector<2x32xf32>
    %44 = tpu.matmul %42, %43, %cst_21 {dimension_numbers = #tpu.dot_dimension_numbers<[1], [0], [0], [1], [0, 0, 1, 1], [], []>} : vector<2x8xf32>, vector<8x32xf32>, vector<2x32xf32> -> vector<2x32xf32>
    %c6 = arith.constant 6 : index
    %c896_22 = arith.constant 896 : index
    %45 = vector.load %arg1[%c6, %c896_22] : memref<32x1024xf32, #tpu.memory_space<vmem>>, vector<1x32xf32>
    %46 = vector.broadcast %45 : vector<1x32xf32> to vector<2x32xf32>
    %47 = arith.addf %44, %46 : vector<2x32xf32>
    %cst_23 = arith.constant 0.000000e+00 : f32
    %48 = vector.broadcast %cst_23 : f32 to vector<2x32xf32>
    %49 = arith.maximumf %47, %48 : vector<2x32xf32>
    %c0_24 = arith.constant 0 : index
    %c256 = arith.constant 256 : index
    %50 = vector.load %arg1[%c0_24, %c256] : memref<32x1024xf32, #tpu.memory_space<vmem>>, vector<32x32xf32>
    %cst_25 = arith.constant dense<0.000000e+00> : vector<2x32xf32>
    %51 = tpu.matmul %49, %50, %cst_25 {dimension_numbers = #tpu.dot_dimension_numbers<[1], [0], [0], [1], [0, 0, 1, 1], [], []>} : vector<2x32xf32>, vector<32x32xf32>, vector<2x32xf32> -> vector<2x32xf32>
    %c7 = arith.constant 7 : index
    %c896_26 = arith.constant 896 : index
    %52 = vector.load %arg1[%c7, %c896_26] : memref<32x1024xf32, #tpu.memory_space<vmem>>, vector<1x32xf32>
    %53 = vector.broadcast %52 : vector<1x32xf32> to vector<2x32xf32>
    %54 = arith.addf %51, %53 : vector<2x32xf32>
    %cst_27 = arith.constant 0.000000e+00 : f32
    %55 = vector.broadcast %cst_27 : f32 to vector<2x32xf32>
    %56 = arith.maximumf %54, %55 : vector<2x32xf32>
    %c0_28 = arith.constant 0 : index
    %c384 = arith.constant 384 : index
    %57 = vector.load %arg1[%c0_28, %c384] : memref<32x1024xf32, #tpu.memory_space<vmem>>, vector<32x16xf32>
    %cst_29 = arith.constant dense<0.000000e+00> : vector<2x16xf32>
    %58 = tpu.matmul %56, %57, %cst_29 {dimension_numbers = #tpu.dot_dimension_numbers<[1], [0], [0], [1], [0, 0, 1, 1], [], []>} : vector<2x32xf32>, vector<32x16xf32>, vector<2x16xf32> -> vector<2x16xf32>
    %c8_30 = arith.constant 8 : index
    %c896_31 = arith.constant 896 : index
    %59 = vector.load %arg1[%c8_30, %c896_31] : memref<32x1024xf32, #tpu.memory_space<vmem>>, vector<1x16xf32>
    %60 = vector.broadcast %59 : vector<1x16xf32> to vector<2x16xf32>
    %61 = arith.addf %58, %60 : vector<2x16xf32>
    %62 = vector.extract_strided_slice %61 {offsets = [0, 0], sizes = [2, 8], strides = [1, 1]} : vector<2x16xf32> to vector<2x8xf32>
    %63 = vector.extract_strided_slice %61 {offsets = [0, 8], sizes = [2, 8], strides = [1, 1]} : vector<2x16xf32> to vector<2x8xf32>
    %64 = arith.subf %42, %62 : vector<2x8xf32>
    %cst_32 = arith.constant 0.000000e+00 : f32
    %65 = vector.broadcast %cst_32 : f32 to vector<2x8xf32>
    %66 = arith.subf %65, %63 : vector<2x8xf32>
    %67 = math.exp %66 : vector<2x8xf32>
    %68 = arith.mulf %64, %67 : vector<2x8xf32>
    %69 = arith.subf %36, %63 : vector<2x8xf32>
    %c9 = arith.constant 9 : index
    %c896_33 = arith.constant 896 : index
    %70 = vector.load %arg1[%c9, %c896_33] : memref<32x1024xf32, #tpu.memory_space<vmem>>, vector<1x8xf32>
    %71 = vector.broadcast %70 : vector<1x8xf32> to vector<2x8xf32>
    %72 = arith.mulf %68, %71 : vector<2x8xf32>
    %c10 = arith.constant 10 : index
    %c896_34 = arith.constant 896 : index
    %73 = vector.load %arg1[%c10, %c896_34] : memref<32x1024xf32, #tpu.memory_space<vmem>>, vector<1x8xf32>
    %74 = vector.broadcast %73 : vector<1x8xf32> to vector<2x8xf32>
    %75 = arith.addf %72, %74 : vector<2x8xf32>
    %c24 = arith.constant 24 : index
    %c768_35 = arith.constant 768 : index
    %76 = vector.load %arg1[%c24, %c768_35] : memref<32x1024xf32, #tpu.memory_space<vmem>>, vector<8x32xf32>
    %cst_36 = arith.constant dense<0.000000e+00> : vector<2x32xf32>
    %77 = tpu.matmul %75, %76, %cst_36 {dimension_numbers = #tpu.dot_dimension_numbers<[1], [0], [0], [1], [0, 0, 1, 1], [], []>} : vector<2x8xf32>, vector<8x32xf32>, vector<2x32xf32> -> vector<2x32xf32>
    %c11 = arith.constant 11 : index
    %c896_37 = arith.constant 896 : index
    %78 = vector.load %arg1[%c11, %c896_37] : memref<32x1024xf32, #tpu.memory_space<vmem>>, vector<1x32xf32>
    %79 = vector.broadcast %78 : vector<1x32xf32> to vector<2x32xf32>
    %80 = arith.addf %77, %79 : vector<2x32xf32>
    %cst_38 = arith.constant 0.000000e+00 : f32
    %81 = vector.broadcast %cst_38 : f32 to vector<2x32xf32>
    %82 = arith.maximumf %80, %81 : vector<2x32xf32>
    %c0_39 = arith.constant 0 : index
    %c512 = arith.constant 512 : index
    %83 = vector.load %arg1[%c0_39, %c512] : memref<32x1024xf32, #tpu.memory_space<vmem>>, vector<32x32xf32>
    %cst_40 = arith.constant dense<0.000000e+00> : vector<2x32xf32>
    %84 = tpu.matmul %82, %83, %cst_40 {dimension_numbers = #tpu.dot_dimension_numbers<[1], [0], [0], [1], [0, 0, 1, 1], [], []>} : vector<2x32xf32>, vector<32x32xf32>, vector<2x32xf32> -> vector<2x32xf32>
    %c12 = arith.constant 12 : index
    %c896_41 = arith.constant 896 : index
    %85 = vector.load %arg1[%c12, %c896_41] : memref<32x1024xf32, #tpu.memory_space<vmem>>, vector<1x32xf32>
    %86 = vector.broadcast %85 : vector<1x32xf32> to vector<2x32xf32>
    %87 = arith.addf %84, %86 : vector<2x32xf32>
    %cst_42 = arith.constant 0.000000e+00 : f32
    %88 = vector.broadcast %cst_42 : f32 to vector<2x32xf32>
    %89 = arith.maximumf %87, %88 : vector<2x32xf32>
    %c0_43 = arith.constant 0 : index
    %c640 = arith.constant 640 : index
    %90 = vector.load %arg1[%c0_43, %c640] : memref<32x1024xf32, #tpu.memory_space<vmem>>, vector<32x48xf32>
    %cst_44 = arith.constant dense<0.000000e+00> : vector<2x48xf32>
    %91 = tpu.matmul %89, %90, %cst_44 {dimension_numbers = #tpu.dot_dimension_numbers<[1], [0], [0], [1], [0, 0, 1, 1], [], []>} : vector<2x32xf32>, vector<32x48xf32>, vector<2x48xf32> -> vector<2x48xf32>
    %c13 = arith.constant 13 : index
    %c896_45 = arith.constant 896 : index
    %92 = vector.load %arg1[%c13, %c896_45] : memref<32x1024xf32, #tpu.memory_space<vmem>>, vector<1x48xf32>
    %93 = vector.broadcast %92 : vector<1x48xf32> to vector<2x48xf32>
    %94 = arith.addf %91, %93 : vector<2x48xf32>
    %95 = vector.extract_strided_slice %94 {offsets = [0, 0], sizes = [2, 24], strides = [1, 1]} : vector<2x48xf32> to vector<2x24xf32>
    %96 = vector.extract_strided_slice %94 {offsets = [0, 24], sizes = [2, 24], strides = [1, 1]} : vector<2x48xf32> to vector<2x24xf32>
    %97 = tpu.concatenate %75, %75, %75 in 1 : vector<2x8xf32>, vector<2x8xf32>, vector<2x8xf32> -> vector<2x24xf32>
    %98 = tpu.concatenate %69, %69, %69 in 1 : vector<2x8xf32>, vector<2x8xf32>, vector<2x8xf32> -> vector<2x24xf32>
    %99 = arith.subf %97, %95 : vector<2x24xf32>
    %cst_46 = arith.constant 0.000000e+00 : f32
    %100 = vector.broadcast %cst_46 : f32 to vector<2x24xf32>
    %101 = arith.subf %100, %96 : vector<2x24xf32>
    %102 = math.exp %101 : vector<2x24xf32>
    %103 = arith.mulf %99, %102 : vector<2x24xf32>
    %104 = arith.subf %98, %96 : vector<2x24xf32>
    %cst_47 = arith.constant 0.000000e+00 : f32
    %105 = vector.broadcast %cst_47 : f32 to vector<2x80xf32>
    %106 = tpu.concatenate %103, %104, %105 in 1 : vector<2x24xf32>, vector<2x24xf32>, vector<2x80xf32> -> vector<2x128xf32>
    %c0_48 = arith.constant 0 : index
    %c0_49 = arith.constant 0 : index
    %107 = vector.load %arg2[%c0_48, %c0_49] : memref<2x128xf32, #tpu.memory_space<vmem>>, vector<2x128xf32>
    tpu.vector_store %arg2[%c0_48, %c0_49], %106 {strides = array<i32>} : memref<2x128xf32, #tpu.memory_space<vmem>>, vector<2x128xf32>,
    return
  }
}

</mosaic_0001>

<bundles_post_ra>
// kernel: _forward.1
= control target key start
LH: loop header
LB: loop body
LE: loop exit
PB: predicated region body
PF: predicated region fallthrough
CT: control target
= control target key end

     0   :  { %7 = vsyncpa [#allocation3], 0  ;;  %s1204_s0 = inlined_call_operand.hbm [shape: f32[2,8], index: 0, kind: input, shape index: {}]   ;;  %s1205_s1 = inlined_call_operand.hbm [shape: f32[32,1024], index: 1, kind: input, shape index: {}]   ;;  %s1206_s2 = inlined_call_operand.vmem [shape: f32[2,128], index: 2, kind: output, shape index: {}]  }
   0x1   :  { %8 = vsyncpa [#allocation5], 0  ;;  %s1094_s9 = smov [#allocation2]   ;;  %s1095_s11 = smov [#allocation4]  }
   0x2   :  { %s15_s10 = sshll.u32 %s1094_s9, 4  ;;  %s24_s12 = sshll.u32 %s1095_s11, 4  ;;  %s16_s10 = int_to_ptr.vmem [resolvable:$true] %s15_s10  ;;  %s25_s12 = int_to_ptr.vmem [resolvable:$true] %s24_s12 }
   0x3   :  { %s1058_s13 = scalar_lea.vmem %s16_s10, 32  ;;  %p1063_p1 = scmp.lt.s32.totalorder %s16_s10, %s16_s10 }
   0x4   :  { %p1059_p0 = scmp.ne.s32.totalorder %s16_s10, %s1058_s13  ;;  %p1064_p2 = scmp.lt.s32.totalorder %s1058_s13, %s1058_s13 }
   0x6   :  { %p1065_p3 = por %p1064_p2, %p1063_p1 }
   0x8   :  { %p1066_p4 = pnand %p1065_p3, %p1059_p0 }
   0xa   :  { %1069 = shalt.err (!%p1066_p4)
}
   0xb   :  { %18 = dma.hbm_to_vmem [thread:$0]  %s1204_s0, 32, %s16_s10, [#allocation3]  }
   0xc   :  { %s1078_s16 = scalar_lea.vmem %s25_s12, 4096  ;;  %p1083_p6 = scmp.lt.s32.totalorder %s25_s12, %s25_s12 }
   0xd   :  { %p1079_p5 = scmp.ne.s32.totalorder %s25_s12, %s1078_s16  ;;  %p1084_p7 = scmp.lt.s32.totalorder %s1078_s16, %s1078_s16 }
   0xf   :  { %p1085_p8 = por %p1084_p7, %p1083_p6 }
  0x11   :  { %p1086_p9 = pnand %p1085_p8, %p1079_p5 }
  0x13   :  { %1089 = shalt.err (!%p1086_p9)
}
  0x14   :  { %s1096_s17 = smov 1024   ;;  %s1097_s18 = smov 64  }
  0x15   :  { %30 = dma.hbm_to_vmem [thread:$0]  %s1205_s1, 4096, %s25_s12, [#allocation5], %s1096_s17, %s1096_s17, %s1097_s18  }
  0x16   :  { %1090 = dma.done.wait [#allocation3], 32  }
  0x17   :  { %1091 = vsyncadd [#allocation3], 4294967264 }
  0x18   :  { %1092 = dma.done.wait [#allocation5], 4096  }
  0x19   :  { %1093 = vsyncadd [#allocation5], 4294963200  ;;  %v1098_v0 = vmov 0.0   ;;  %vm1099_vm0 = vmmov 0   ;;  %vm40_vm1 = vcmask 64512   ;;  %v38_v1 = vld [vmem:[#allocation4 + $0x30] sm:$0xff] }
  0x1a   :  { %947 = vmatprep.subr.mxu0 %v1098_v0  ;;  %949 = vmatprep.mubr.msk.f32.mxu0 %vm1099_vm0, %v1098_v0  ;;  %v37_v2 = vld [vmem:[#allocation2] sm:$0x3]  ;;  %v116_v3 = vld [vmem:[#allocation4 + $0x70] sm:$0xff]  ;;  %v195_v4 = vld [vmem:[#allocation4 + $0xc0] sm:$0xff]  ;;  %vm197_vm2 = vcmask 261120   ;;  %s1100_s0 = smov 120  }
  0x1b   :  { %952 = vmatprep.subr.mxu1 %v1098_v0  ;;  %954 = vmatprep.mubr.msk.f32.mxu1 %vm1099_vm0, %v1098_v0  ;;  %v39_v5 = vld [vmem:[#allocation4 + $0x38] ss:$0 sm:$0xff]  ;;  %v194_v10 = vld [vmem:[#allocation4 + $0x80] sm:$0xff]  ;;  %v275_v13 = vld [vmem:[#allocation4 + $0xc8] sm:$0xff]  ;;  %s1101_s1 = smov 16   ;;  %s1102_s21 = smov 8  }
  0x1c   :  { %948 = vmatpush3.msra.mxu0 %v38_v1  ;;  %953 = vmatpush3.msra.mxu1 %v116_v3  ;;  %v193_v11 = vld [vmem:[#allocation4 + $0x40] sm:$0xff]  ;;  %v117_v14 = vld [vmem:[#allocation4 + $0x39] ss:$0 sm:$0xff]  ;;  %v274_v19 = vld [vmem:[#allocation4 + $0x88] sm:$0xff]  ;;  %s1103_s22 = smov 104   ;;  %vm859_vm3 = vcmask 130048  }
  0x1d   :  { %950 = vmatmul.mubr.msk.f32.vlgmr.msra.gmra.mxu0 %vm40_vm1, %v37_v2  ;;  %957 = vmatprep.subr.mxu0 %v1098_v0  ;;  %v192_v12 = vld [vmem:[#allocation4] sm:$0xff]  ;;  %v273_v20 = vld [vmem:[#allocation4 + $0x48] sm:$0xff]  ;;  %v196_v22 = vld [vmem:[#allocation4 + $0x3a] ss:$0 sm:$0xff]  ;;  %s1104_s23 = smov 24   ;;  %vm888_vm4 = vcmask 195584  }
  0x1e   :  { %965 = vmatprep.mubr.msk.f32.mxu0 %vm1099_vm0, %v1098_v0  ;;  %968 = vmatprep.subr.mxu1 %v1098_v0  ;;  %v272_v21 = vld [vmem:[#allocation4 + $0x8] sm:$0xff]  ;;  %v276_v27 = vld [vmem:[#allocation4 + $0x3b] ss:$0 sm:$0xff]  ;;  %v368_v33 = vld [vmem:[#allocation4 + $0xb0] sm:$0xff]  ;;  %vm890_vm5 = vcmask 392192  }
  0x1f   :  { %958 = vmatpush3.msra.mxu0 %v195_v4  ;;  %v447_v34 = vld [vmem:[#allocation4 + $0xd0] sm:$0xff]  ;;  %v364_v37 = vld [vmem:[#allocation4 + $0x3c] ss:$0 sm:$0xff]  ;;  %v366_v40 = vld [vmem:[#allocation4 + $0x3d] ss:$0 sm:$0xff] }
  0x20   :  { %959 = vmatprep.subr.mxu0 %v1098_v0  ;;  %v446_v43 = vld [vmem:[#allocation4 + $0x90] sm:$0xff]  ;;  %v526_v46 = vld [vmem:[#allocation4 + $0xd8] sm:$0xff] }
  0x21   :  { %960 = vmatpush3.msra.mxu0 %v194_v10  ;;  %v445_v44 = vld [vmem:[#allocation4 + $0x50] sm:$0xff]  ;;  %v369_v47 = vld [vmem:[#allocation4 + $0x3e] ss:$0 sm:$0xff]  ;;  %v448_v55 = vld [vmem:[#allocation4 + $0x3f] ss:$0 sm:$0xff] }
  0x22   :  { %961 = vmatprep.subr.mxu0 %v1098_v0  ;;  %v444_v45 = vld [vmem:[#allocation4 + $0x10] sm:$0xff]  ;;  %v525_v52 = vld [vmem:[#allocation4 + $0x98] sm:$0xff]  ;;  %v698_v10 = vld [vmem:[#allocation4 + $0xe0] sm:$0xff] }
  0x23   :  { %962 = vmatpush3.msra.mxu0 %v193_v11  ;;  %v524_v53 = vld [vmem:[#allocation4 + $0x58] sm:$0xff]  ;;  %v619_v3 = vld [vmem:[#allocation4 + $0xf0] sm:$0xff] }
  0x24   :  { %963 = vmatprep.subr.mxu0 %v1098_v0  ;;  %v523_v54 = vld [vmem:[#allocation4 + $0x18] sm:$0xff] }
  0x25   :  { %964 = vmatpush3.msra.mxu0 %v192_v12  ;;  %v527_v60 = vld [vmem:[#allocation4 + $0x78] ss:$0 sm:$0xff]  ;;  %v615_v12 = vld [vmem:[#allocation4 + $0x79] ss:$0 sm:$0xff] }
  0x26   :  { %979 = vmatprep.subr.mxu0 %v1098_v0 }
  0xdd   :  { %v110_v6 = vpop.f32.mrf.mxu0 }
  0xde   :  { %v111_v7 = vadd.f32 %v110_v6, %v39_v5  ;;  %v115_v5 = vld [vmem:[#allocation4 + $0x7e] ss:$0 sm:$0xff] }
  0xdf   :  { %v951_v8 = vpop.f32.mrf.mxu0 }
  0xe0   :  { %v114_v9 = vmax.f32 %v111_v7, 0.0 }
  0xe2   :  { %955 = vmatmul.mubr.msk.f32.vlgmr.msra.gmra.mxu1 %vm40_vm1, %v114_v9 }
  0xe3   :  { %976 = vmatprep.mubr.msk.f32.mxu1 %vm1099_vm0, %v1098_v0  ;;  %969 = vmatpush3.msra.mxu1 %v275_v13 }
  0xe4   :  { %970 = vmatprep.subr.mxu1 %v1098_v0 }
  0xe5   :  { %971 = vmatpush3.msra.mxu1 %v274_v19  ;;  %v696_v19 = vld [vmem:[#allocation4 + $0x60] sm:$0xff] }
  0xe6   :  { %972 = vmatprep.subr.mxu1 %v1098_v0 }
  0xe7   :  { %973 = vmatpush3.msra.mxu1 %v273_v20  ;;  %v695_v20 = vld [vmem:[#allocation4 + $0x20] sm:$0xff] }
  0xe8   :  { %974 = vmatprep.subr.mxu1 %v1098_v0 }
  0xe9   :  { %975 = vmatpush3.msra.mxu1 %v272_v21  ;;  %v777_v21 = vld [vmem:[#allocation4 + $0xe8] sm:$0xff] }
  0xea   :  { %984 = vmatprep.subr.mxu1 %v1098_v0 }
 0x1a2   :  { %v187_v15 = vpop.f32.mrf.mxu1 }
 0x1a3   :  { %v188_v16 = vadd.f32 %v187_v15, %v117_v14  ;;  %v617_v15 = vld [vmem:[#allocation4 + $0x7a] ss:$0 sm:$0xff] }
 0x1a4   :  { %v956_v17 = vpop.f32.mrf.mxu1 }
 0x1a5   :  { %v191_v18 = vmax.f32 %v188_v16, 0.0 }
 0x1a7   :  { %966 = vmatmul.mubr.msk.f32.vlgmr.msra.gmra.mxu0 %vm197_vm2, %v191_v18  ;;  %v697_v18 = vld [vmem:[#allocation4 + $0xa0] sm:$0xff] }
 0x1a8   :  { %981 = vmatprep.mubr.msk.f32.mxu0 %vm1099_vm0, %v1098_v0  ;;  %980 = vmatpush3.msra.mxu0 %v368_v33 }
 0x1a9   :  { %995 = vmatprep.subr.mxu0 %v1098_v0 }
 0x267   :  { %v267_v23 = vpop.f32.mrf.mxu0 }
 0x268   :  { %v268_v24 = vadd.f32 %v267_v23, %v196_v22  ;;  %v620_v22 = vld [vmem:[#allocation4 + $0x7b] ss:$0 sm:$0xff] }
 0x269   :  { %v967_v25 = vpop.f32.mrf.mxu0 }
 0x26a   :  { %v271_v26 = vmax.f32 %v268_v24, 0.0 }
 0x26c   :  { %977 = vmatmul.mubr.msk.f32.vlgmr.msra.gmra.mxu1 %vm197_vm2, %v271_v26 }
 0x26d   :  { %992 = vmatprep.mubr.msk.f32.mxu1 %vm1099_vm0, %v1098_v0  ;;  %985 = vmatpush3.msra.mxu1 %v447_v34 }
 0x26e   :  { %986 = vmatprep.subr.mxu1 %v1098_v0 }
 0x26f   :  { %987 = vmatpush3.msra.mxu1 %v446_v43 }
 0x270   :  { %988 = vmatprep.subr.mxu1 %v1098_v0 }
 0x271   :  { %989 = vmatpush3.msra.mxu1 %v445_v44 }
 0x272   :  { %990 = vmatprep.subr.mxu1 %v1098_v0 }
 0x273   :  { %991 = vmatpush3.msra.mxu1 %v444_v45 }
 0x274   :  { %1006 = vmatprep.subr.mxu1 %v1098_v0 }
 0x32c   :  { %v346_v28 = vpop.f32.mrf.mxu1 }
 0x32d   :  { %v347_v29 = vadd.f32 %v346_v28, %v276_v27  ;;  %v776_v27 = vld [vmem:[#allocation4 + $0xa8] sm:$0xff] }
 0x32e   :  { %v978_v30 = vpop.f32.mrf.mxu1  ;;  %v775_v28 = vld [vmem:[#allocation4 + $0x68] sm:$0xff] }
 0x32f   :  { %v351_v31 = vsub.f32 0.0, %v347_v29  ;;  %360 = vrot.lane.b32.xlu1 %v347_v29, %s1100_s0  ;;  %v350_v36 = vsub.f32 %v114_v9, %v347_v29  ;;  %v774_v29 = vld [vmem:[#allocation4 + $0x28] sm:$0xff]  ;;  %v699_v30 = vld [vmem:[#allocation4 + $0x7c] ss:$0 sm:$0xff] }
 0x331   :  { %v352_v32 = vmul.f32 1.442695, %v351_v31 }
 0x333   :  { %1044 = vpow2.f32 %v352_v32 }
 0x340   :  { %v1045_v35 = vpop.eup %1044 }
 0x341   :  { %355 = vrot.lane.b32.xlu0 %v1045_v35, %s1100_s0  ;;  %v778_v35 = vld [vmem:[#allocation4 + $0x7d] ss:$0 sm:$0xff] }
 0x3a1   :  { %v361_v6 = vpop.permute.xlu1 %360 }
 0x3a2   :  { %v363_v7 = vsub.f32 %v115_v5, %v361_v6 }
 0x3b3   :  { %v356_v38 = vpop.permute.xlu0 %355 }
 0x3b4   :  { %v358_v39 = vmul.f32 %v356_v38, %v350_v36 }
 0x3b6   :  { %v365_v41 = vmul.f32 %v364_v37, %v358_v39 }
 0x3b8   :  { %v1158_v42 = vadd.f32 %v366_v40, %v365_v41 }
 0x3ba   :  { %982 = vmatmul.mubr.msk.f32.vlgmr.msra.gmra.mxu0 %vm40_vm1, %v1158_v42 }
 0x3bb   :  { %1003 = vmatprep.mubr.msk.f32.mxu0 %vm1099_vm0, %v1098_v0  ;;  %996 = vmatpush3.msra.mxu0 %v526_v46 }
 0x3bc   :  { %997 = vmatprep.subr.mxu0 %v1098_v0 }
 0x3bd   :  { %998 = vmatpush3.msra.mxu0 %v525_v52 }
 0x3be   :  { %999 = vmatprep.subr.mxu0 %v1098_v0 }
 0x3bf   :  { %1000 = vmatpush3.msra.mxu0 %v524_v53 }
 0x3c0   :  { %1001 = vmatprep.subr.mxu0 %v1098_v0 }
 0x3c1   :  { %1002 = vmatpush3.msra.mxu0 %v523_v54 }
 0x3c2   :  { %1011 = vmatprep.subr.mxu0 %v1098_v0 }
 0x47a   :  { %v439_v48 = vpop.f32.mrf.mxu0 }
 0x47b   :  { %v440_v49 = vadd.f32 %v439_v48, %v369_v47 }
 0x47c   :  { %v983_v50 = vpop.f32.mrf.mxu0 }
 0x47d   :  { %v443_v51 = vmax.f32 %v440_v49, 0.0 }
 0x47f   :  { %993 = vmatmul.mubr.msk.f32.vlgmr.msra.gmra.mxu1 %vm197_vm2, %v443_v51 }
 0x480   :  { %1008 = vmatprep.mubr.msk.f32.mxu1 %vm1099_vm0, %v1098_v0  ;;  %1007 = vmatpush3.msra.mxu1 %v619_v3 }
 0x481   :  { %1022 = vmatprep.subr.mxu1 %v1098_v0 }
 0x53f   :  { %v518_v56 = vpop.f32.mrf.mxu1 }
 0x540   :  { %v519_v57 = vadd.f32 %v518_v56, %v448_v55 }
 0x541   :  { %v994_v58 = vpop.f32.mrf.mxu1 }
 0x542   :  { %v522_v59 = vmax.f32 %v519_v57, 0.0 }
 0x544   :  { %1004 = vmatmul.mubr.msk.f32.vlgmr.msra.gmra.mxu0 %vm197_vm2, %v522_v59 }
 0x545   :  { %1019 = vmatprep.mubr.msk.f32.mxu0 %vm1099_vm0, %v1098_v0  ;;  %1012 = vmatpush3.msra.mxu0 %v698_v10 }
 0x546   :  { %1013 = vmatprep.subr.mxu0 %v1098_v0 }
 0x547   :  { %1014 = vmatpush3.msra.mxu0 %v697_v18 }
 0x548   :  { %1015 = vmatprep.subr.mxu0 %v1098_v0 }
 0x549   :  { %1016 = vmatpush3.msra.mxu0 %v696_v19 }
 0x54a   :  { %1017 = vmatprep.subr.mxu0 %v1098_v0 }
 0x54b   :  { %1018 = vmatpush3.msra.mxu0 %v695_v20 }
 0x604   :  { %v597_v61 = vpop.f32.mrf.mxu0 }
 0x605   :  { %v598_v62 = vadd.f32 %v597_v61, %v527_v60 }
 0x606   :  { %v1005_v63 = vpop.f32.mrf.mxu0 }
 0x607   :  { %v602_v1 = vsub.f32 0.0, %v598_v62  ;;  %611 = vrot.lane.b32.xlu1 %v598_v62, %s1100_s0  ;;  %v601_v11 = vsub.f32 %v1158_v42, %v598_v62 }
 0x609   :  { %v603_v2 = vmul.f32 1.442695, %v602_v1 }
 0x60b   :  { %1046 = vpow2.f32 %v603_v2 }
 0x618   :  { %v1047_v4 = vpop.eup %1046 }
 0x619   :  { %606 = vrot.lane.b32.xlu0 %v1047_v4, %s1100_s0 }
 0x679   :  { %v612_v8 = vpop.permute.xlu1 %611 }
 0x67a   :  { %v1180_v9 = vsub.f32 %v363_v7, %v612_v8 }
 0x67c   :  { %865 = vrot.lane.b32.xlu1 %v1180_v9, %s1101_s1  ;;  %862 = vrot.lane.b32.xlu0 %v1180_v9, %s1102_s21 }
 0x68b   :  { %v607_v13 = vpop.permute.xlu0 %606 }
 0x68c   :  { %v609_v14 = vmul.f32 %v607_v13, %v601_v11 }
 0x68e   :  { %v616_v16 = vmul.f32 %v615_v12, %v609_v14 }
 0x690   :  { %v618_v17 = vadd.f32 %v617_v15, %v616_v16 }
 0x692   :  { %852 = vrot.lane.b32.xlu1 %v618_v17, %s1102_s21  ;;  %1009 = vmatmul.mubr.msk.f32.vlgmr.msra.gmra.mxu1 %vm40_vm1, %v618_v17 }
 0x693   :  { %1030 = vmatprep.mubr.msk.f32.mxu1 %vm1099_vm0, %v1098_v0  ;;  %1023 = vmatpush3.msra.mxu1 %v777_v21 }
 0x694   :  { %1024 = vmatprep.subr.mxu1 %v1098_v0 }
 0x695   :  { %1025 = vmatpush3.msra.mxu1 %v776_v27 }
 0x696   :  { %1026 = vmatprep.subr.mxu1 %v1098_v0 }
 0x697   :  { %1027 = vmatpush3.msra.mxu1 %v775_v28 }
 0x698   :  { %1028 = vmatprep.subr.mxu1 %v1098_v0 }
 0x699   :  { %1029 = vmatpush3.msra.mxu1 %v774_v29 }
 0x6ee   :  { %v863_v41 = vpop.permute.xlu0 %862  ;;  %v866_v42 = vpop.permute.xlu1 %865 }
 0x6ef   :  { %v868_v43 = vsel %vm40_vm1, %v1180_v9, %v863_v41 }
 0x6f0   :  { %v869_v44 = vsel %vm859_vm3, %v868_v43, %v866_v42 }
 0x704   :  { %v853_v47 = vpop.permute.xlu1 %852 }
 0x705   :  { %v858_v49 = vsel %vm40_vm1, %v618_v17, %v853_v47 }
 0x752   :  { %v690_v23 = vpop.f32.mrf.mxu1 }
 0x753   :  { %v691_v24 = vadd.f32 %v690_v23, %v620_v22 }
 0x754   :  { %v1010_v25 = vpop.f32.mrf.mxu1 }
 0x755   :  { %v694_v26 = vmax.f32 %v691_v24, 0.0 }
 0x757   :  { %1020 = vmatmul.mubr.msk.f32.vlgmr.msra.gmra.mxu0 %vm197_vm2, %v694_v26 }
 0x817   :  { %v769_v31 = vpop.f32.mrf.mxu0 }
 0x818   :  { %v770_v32 = vadd.f32 %v769_v31, %v699_v30 }
 0x819   :  { %v1021_v33 = vpop.f32.mrf.mxu0 }
 0x81a   :  { %v773_v34 = vmax.f32 %v770_v32, 0.0 }
 0x81c   :  { %1031 = vmatmul.mubr.msk.f32.vlgmr.msra.gmra.mxu1 %vm197_vm2, %v773_v34 }
 0x8dc   :  { %v848_v36 = vpop.f32.mrf.mxu1 }
 0x8dd   :  { %v849_v37 = vadd.f32 %v848_v36, %v778_v35 }
 0x8de   :  { %v1032_v38 = vpop.f32.mrf.mxu1 }
 0x8df   :  { %v871_v39 = vsub.f32 0.0, %v849_v37  ;;  %880 = vrot.lane.b32.xlu0 %v849_v37, %s1103_s22 }
 0x8e1   :  { %v872_v40 = vmul.f32 1.442695, %v871_v39 }
 0x8e3   :  { %1048 = vpow2.f32 %v872_v40  ;;  %855 = vrot.lane.b32.xlu0 %v618_v17, %s1101_s1 }
 0x8f0   :  { %v1049_v0 = vpop.eup %1048 }
 0x8f1   :  { %875 = vrot.lane.b32.xlu1 %v1049_v0, %s1103_s22 }
 0x951   :  { %v881_v45 = vpop.permute.xlu0 %880 }
 0x952   :  { %v883_v46 = vsub.f32 %v869_v44, %v881_v45 }
 0x954   :  { %885 = vrot.lane.b32.xlu0 %v883_v46, %s1104_s23 }
 0x955   :  { %v856_v48 = vpop.permute.xlu0 %855 }
 0x956   :  { %v860_v50 = vsel %vm859_vm3, %v858_v49, %v856_v48 }
 0x957   :  { %v870_v52 = vsub.f32 %v860_v50, %v849_v37 }
 0x963   :  { %v876_v51 = vpop.permute.xlu1 %875 }
 0x964   :  { %v878_v53 = vmul.f32 %v876_v51, %v870_v52 }
 0x9c6   :  { %v886_v54 = vpop.permute.xlu0 %885 }
 0x9c7   :  { %v889_v55 = vsel %vm888_vm4, %v878_v53, %v886_v54 }
 0x9c8   :  { %v891_v56 = vsel %vm890_vm5, %v889_v55, 0.0 }
 0x9c9   :  { %892 = vst [vmem:[%s1206_s2] sm:$0x3] %v891_v56 }
 0x9ca   :  { %897 = vsyncpa [#allocation3], 1 }
 0x9cb   :  { %898 = vsyncpa [#allocation5], 1 }

</bundles_post_ra>
